<compile_context>
chip_gen: v5e
topology: v5e:2x2
jax: 0.10.0
libtpu: 0.0.40
codegen_flags: <defaults>
</compile_context>

<pallas_src>
import jax
import jax.numpy as jnp
from jax.experimental import pallas as pl
from jax.experimental.pallas import tpu as pltpu


_NEG_BIG = -1e30   # kills padded logit lanes in the log-sum-exp (f32 softmax path)
_MIB = 1024 * 1024

# Feature flag (detected on the first call): whether pipeline_mode=pl.Buffered(1)
# is accepted for the constant weight/bias blocks.
_SINGLE_BUFFER_WEIGHTS_OK = None


def _round_up(x, m):
    return ((x + m - 1) // m) * m


# ----------------------------------------------------------------------------
# Kernel body
# ----------------------------------------------------------------------------
def fcnet_kernel(x_ref, w1_ref, b1_ref, w2_ref, b2_ref,
                 w3_ref, b3_ref, w4_ref, b4_ref, o_ref):
    # fc1 + relu: cast the f32 input tile to bf16 on the VPU (hidden under the
    # next tile's DMA); MXU matmul with f32 accumulation.
    h = jnp.dot(x_ref[...].astype(jnp.bfloat16), w1_ref[...],
                preferred_element_type=jnp.float32)
    h = jnp.maximum(h + b1_ref[...], 0.0)
    # fc2 + relu
    h = jnp.dot(h.astype(jnp.bfloat16), w2_ref[...],
                preferred_element_type=jnp.float32)
    h = jnp.maximum(h + b2_ref[...], 0.0)
    # fc3 + relu
    h = jnp.dot(h.astype(jnp.bfloat16), w3_ref[...],
                preferred_element_type=jnp.float32)
    h = jnp.maximum(h + b3_ref[...], 0.0)
    # fc4 (output dim padded to a multiple of 128 lanes; padded bias = -1e30)
    logits = jnp.dot(h.astype(jnp.bfloat16), w4_ref[...],
                     preferred_element_type=jnp.float32) + b4_ref[...]
    # log_softmax over dim=1 (lane axis), numerically stable in f32. Padded
    # lanes sit at -1e30 so they never win the max and exp(.) underflows to 0.
    m = jnp.max(logits, axis=1, keepdims=True)
    z = logits - m
    lse = jnp.log(jnp.sum(jnp.exp(z), axis=1, keepdims=True))
    o_ref[...] = (z - lse).astype(o_ref.dtype)


# ----------------------------------------------------------------------------
# Hardware / tiling heuristics
# ----------------------------------------------------------------------------
def _tpu_vmem_and_cores():
    """Returns (physical VMEM bytes per core, is_two_tensorcore_chip, big row align)."""
    phys_vmem = 64 * _MIB            # conservative default (v7x per-TC)
    try:
        info = pltpu.get_tpu_info()
        phys_vmem = int(getattr(info, "vmem_capacity_bytes", phys_vmem))
    except Exception:
        pass
    kind = ""
    try:
        kind = jax.devices()[0].device_kind.lower()
    except Exception:
        pass
    two_tc = "v7" in kind            # v7x: 2 TensorCores per chip
    big_align = 128 if "v5" in kind else 256
    return phys_vmem, two_tc, big_align


def _pick_batch_tile(B, block_batch, two_tc, big_align, hid):
    # v7x: keep the activation live set (bb*hid in f32 + bf16 copies) plus the
    # single-buffered weights inside the 64 MiB budget once hid gets big.
    if two_tc and hid >= 2048:
        block_batch = min(block_batch, 256)
    # 16-row alignment for bf16 sublane packing of the in-kernel casts;
    # full 128/256-row alignment once batches are big enough to fill it.
    align = big_align if min(B, block_batch) >= big_align else 16
    block_batch = max(align, (block_batch // align) * align)
    if two_tc and B <= block_batch and pl.cdiv(B, 2) >= 256:
        # Split a single-tile-able batch across the two TensorCores only when
        # each half still has >= 256 rows (the "parallel" axis shards the grid).
        bb = _round_up(pl.cdiv(B, 2), align)
    else:
        # Single-TC chips (v5e/v6e): one grid step whenever B <= block_batch.
        bb = min(block_batch, _round_up(B, align))
    return int(max(align, min(bb, block_batch)))


def _derive_vmem_limit(bb, in_sz, hid, out_pad, out_itemsize, phys_vmem):
    w_bytes = 2 * (in_sz * hid + 2 * hid * hid + hid * out_pad)   # bf16 weights
    b_bytes = 4 * (3 * hid + out_pad)                             # f32 biases
    x_bytes = 2 * bb * in_sz * 4                                  # f32 x tile, 2 bufs
    o_bytes = 2 * bb * out_pad * out_itemsize                     # out tile, 2 bufs
    act_bytes = 2 * bb * hid * (4 + 2)                            # live f32 h + bf16 cast
    # Estimate assumes double-buffered weights (covers the non-Buffered(1)
    # fallback path), then adds 2x headroom for compiler temporaries.
    needed = 2 * (w_bytes + b_bytes) + x_bytes + o_bytes + act_bytes
    cap = min(112 * _MIB, int(phys_vmem * 7 // 8))   # ~112 MiB (v5e/v6e), ~56 MiB (v7x)
    return int(min(cap, max(2 * needed, 16 * _MIB)))


# ----------------------------------------------------------------------------
# Parameter preparation (one-time; do NOT redo per forward call)
# ----------------------------------------------------------------------------
def prepare_fcnet_params(params):
    """One-time conversion to kernel dtypes/layout.

    params: dict with w1..w4 in [in, out] layout and b1..b4 as [1, out], f32.
    Returns a pytree with bf16 weights, f32 biases, and fc4 lane-padded to a
    multiple of 128 (zero weight cols, -1e30 bias in padded lanes).
    """
    out_sz = int(params["w4"].shape[1])
    out_pad = _round_up(out_sz, 128)
    w4, b4 = params["w4"], params["b4"]
    if out_pad != out_sz:
        w4 = jnp.pad(w4, ((0, 0), (0, out_pad - out_sz)))
        b4 = jnp.pad(b4, ((0, 0), (0, out_pad - out_sz)), constant_values=_NEG_BIG)
    return {
        "w1": params["w1"].astype(jnp.bfloat16),
        "b1": params["b1"].astype(jnp.float32),
        "w2": params["w2"].astype(jnp.bfloat16),
        "b2": params["b2"].astype(jnp.float32),
        "w3": params["w3"].astype(jnp.bfloat16),
        "b3": params["b3"].astype(jnp.float32),
        "w4": w4.astype(jnp.bfloat16),
        "b4": b4.astype(jnp.float32),
        "output_size": out_sz,
    }


# ----------------------------------------------------------------------------
# Forward pass
# ----------------------------------------------------------------------------
def fcnet_forward(x, prep, *, block_batch=512, out_dtype=jnp.bfloat16):
    """Fused FCNet forward (Pallas TPU kernel).

    x: [B, input_size] float32
    prep: output of prepare_fcnet_params().
    Returns [B, output_size] in out_dtype (bf16 by default; upcast downstream
    if f32 is required).
    """
    w1, b1 = prep["w1"], prep["b1"]
    w2, b2 = prep["w2"], prep["b2"]
    w3, b3 = prep["w3"], prep["b3"]
    w4, b4 = prep["w4"], prep["b4"]
    out_sz = prep["output_size"]

    B, in_sz = x.shape
    hid = w1.shape[1]
    out_pad = w4.shape[1]
    out_itemsize = jnp.dtype(out_dtype).itemsize

    phys_vmem, two_tc, big_align = _tpu_vmem_and_cores()
    bb = _pick_batch_tile(B, block_batch, two_tc, big_align, hid)
    B_pad = _round_up(B, bb)
    grid = B_pad // bb

    # Whole-weight-resident design: all four bf16 weight matrices live in VMEM.
    # TODO(synk): add a K/N-tiled path (extra "arbitrary" grid axis with a VMEM
    # accumulator, or pltpu.emit_pipeline with weights in pl.ANY) once resident
    # weights exceed the budget below (hid ~>= 2300 on v7x).
    w_res_bytes = 2 * (in_sz * hid + 2 * hid * hid + hid * out_pad)
    if w_res_bytes > 0.45 * phys_vmem:
        raise NotImplementedError(
            f"hidden_size={hid}: resident bf16 weights ({w_res_bytes / _MIB:.1f} MiB) "
            "exceed the whole-weight-resident VMEM budget; needs a K/N-tiled path.")

    # x stays f32; only the ragged batch tail is padded (aligned batches pay nothing).
    xp = x if x.dtype == jnp.float32 else x.astype(jnp.float32)
    if B_pad != B:
        xp = jnp.pad(xp, ((0, B_pad - B), (0, 0)))

    vmem_limit = _derive_vmem_limit(bb, in_sz, hid, out_pad, out_itemsize, phys_vmem)

    flops = 2 * B_pad * (in_sz * hid + 2 * hid * hid + hid * out_pad)
    bytes_accessed = (B_pad * in_sz * 4
                      + (w1.size + w2.size + w3.size + w4.size) * 2
                      + (b1.size + b2.size + b3.size + b4.size) * 4
                      + B_pad * out_pad * out_itemsize)
    cost = pl.CostEstimate(flops=flops,
                           transcendentals=B_pad * (out_pad + 1),
                           bytes_accessed=bytes_accessed)

    def _const_spec(shape, single_buffer):
        # Weights/biases use a constant index_map (fetched once); single-buffer
        # them so the default double buffer isn't dead VMEM.
        if single_buffer:
            return pl.BlockSpec(shape, lambda i: (0, 0),
                                pipeline_mode=pl.Buffered(1))
        return pl.BlockSpec(shape, lambda i: (0, 0))

    def _call(single_buffer):
        full = lambda shape: _const_spec(shape, single_buffer)
        grid_spec = pltpu.PrefetchScalarGridSpec(
            num_scalar_prefetch=0,
            grid=(grid,),
            in_specs=[
                pl.BlockSpec((bb, in_sz), lambda i: (i, 0)),   # x tile (f32)
                full((in_sz, hid)), full((1, hid)),            # fc1
                full((hid, hid)),   full((1, hid)),            # fc2
                full((hid, hid)),   full((1, hid)),            # fc3
                full((hid, out_pad)), full((1, out_pad)),      # fc4 (lane-padded)
            ],
            # Lane-dense (multiple-of-128) bf16 output tile -> unmasked stores,
            # half the writeback bytes of f32.
            out_specs=pl.BlockSpec((bb, out_pad), lambda i: (i, 0)),
        )
        return pl.pallas_call(
            fcnet_kernel,
            out_shape=jax.ShapeDtypeStruct((B_pad, out_pad), out_dtype),
            grid_spec=grid_spec,
            compiler_params=pltpu.CompilerParams(
                dimension_semantics=("parallel",),
                vmem_limit_bytes=vmem_limit),
            cost_estimate=cost,
        )(xp, w1, b1, w2, b2, w3, b3, w4, b4)

    global _SINGLE_BUFFER_WEIGHTS_OK
    modes = ([True, False] if _SINGLE_BUFFER_WEIGHTS_OK is None
             else [_SINGLE_BUFFER_WEIGHTS_OK])
    out = None
    last_err = None
    for single_buffer in modes:
        try:
            out = _call(single_buffer)
            _SINGLE_BUFFER_WEIGHTS_OK = single_buffer
            break
        except Exception as err:  # pipeline_mode unsupported -> default buffering
            last_err = err
    if out is None:
        raise last_err

    # TODO(synk): for very large batches with out_sz << 128, pack several batch
    # tiles' real logit lanes into one 128-lane slab to cut the remaining
    # write amplification; the bf16 store already halves it.

    # Drop batch padding and padded output lanes.
    return out[:B, :out_sz]


# ----------------------------------------------------------------------------
# Init + references
# ----------------------------------------------------------------------------
def init_fcnet_params(key, input_size, hidden_size, output_size):
    """Deterministic synthetic params mimicking nn.Linear's uniform init (f32)."""
    def linear(k, fan_in, fan_out):
        kw, kb = jax.random.split(k)
        bound = 1.0 / jnp.sqrt(jnp.float32(fan_in))
        # stored directly in [in, out] layout (== PyTorch W.T)
        w = jax.random.uniform(kw, (fan_in, fan_out), jnp.float32, -bound, bound)
        b = jax.random.uniform(kb, (1, fan_out), jnp.float32, -bound, bound)
        return w, b

    k1, k2, k3, k4 = jax.random.split(key, 4)
    w1, b1 = linear(k1, input_size, hidden_size)
    w2, b2 = linear(k2, hidden_size, hidden_size)
    w3, b3 = linear(k3, hidden_size, hidden_size)
    w4, b4 = linear(k4, hidden_size, output_size)
    return {"w1": w1, "b1": b1, "w2": w2, "b2": b2,
            "w3": w3, "b3": b3, "w4": w4, "b4": b4}


def fcnet_reference(x, p):
    """Pure-JAX reference mirroring the kernel's bf16-matmul / f32-accumulate path."""
    bf = jnp.bfloat16
    h = jnp.maximum(jnp.dot(x.astype(bf), p["w1"].astype(bf),
                            preferred_element_type=jnp.float32) + p["b1"], 0.0)
    h = jnp.maximum(jnp.dot(h.astype(bf), p["w2"].astype(bf),
                            preferred_element_type=jnp.float32) + p["b2"], 0.0)
    h = jnp.maximum(jnp.dot(h.astype(bf), p["w3"].astype(bf),
                            preferred_element_type=jnp.float32) + p["b3"], 0.0)
    logits = jnp.dot(h.astype(bf), p["w4"].astype(bf),
                     preferred_element_type=jnp.float32) + p["b4"]
    return jax.nn.log_softmax(logits, axis=1)


def fcnet_reference_f32(x, p):
    """Full-f32 reference (matches the original PyTorch module numerics).

    Note: the kernel uses bf16 MXU inputs + f32 accumulation and a bf16 output
    store, so it matches this reference only to ~bf16 tolerance; keep the
    matmuls/output in f32 if bit-closer parity is required."""
    h = jax.nn.relu(x @ p["w1"] + p["b1"])
    h = jax.nn.relu(h @ p["w2"] + p["b2"])
    h = jax.nn.relu(h @ p["w3"] + p["b3"])
    return jax.nn.log_softmax(h @ p["w4"] + p["b4"], axis=1)


if __name__ == "__main__":
    key = jax.random.PRNGKey(0)
    k_x, k_p = jax.random.split(key)

    batch = 60          # not a multiple of the tile -> exercises the padded tail
    input_size = 32
    hidden_size = 32
    output_size = 16

    x = jax.random.normal(k_x, (batch, input_size), jnp.float32)
    raw_params = init_fcnet_params(k_p, input_size, hidden_size, output_size)
    prep_params = prepare_fcnet_params(raw_params)   # one-time dtype/pad conversion

    out = fcnet_forward(x, prep_params)
    out = jax.block_until_ready(out)
    assert out.shape == (batch, output_size)
    out_f32 = out.astype(jnp.float32)

    # Check vs a reference with identical bf16-matmul numerics (kernel output is bf16).
    ref = fcnet_reference(x, raw_params)
    assert jnp.allclose(out_f32, ref, atol=3e-2, rtol=3e-2), "mismatch vs bf16 reference"

    # Loose check vs the pure-f32 (PyTorch-equivalent) reference.
    ref32 = fcnet_reference_f32(x, raw_params)
    assert jnp.allclose(out_f32, ref32, atol=8e-2, rtol=8e-2), "mismatch vs f32 reference"

    # Second call exercises the cached feature-detection path.
    out2 = jax.block_until_ready(fcnet_forward(x, prep_params))
    assert out2.shape == (batch, output_size)

    print("KERNEL_OK")
</pallas_src>

<mosaic_0001>
module attributes {stable_mosaic.version = 11 : i64} {
  func.func @fcnet_kernel(%arg0: i32, %arg1: memref<64x32xf32, #tpu.memory_space<vmem>>, %arg2: memref<32x32xbf16, #tpu.memory_space<vmem>>, %arg3: memref<1x32xf32, #tpu.memory_space<vmem>>, %arg4: memref<32x32xbf16, #tpu.memory_space<vmem>>, %arg5: memref<1x32xf32, #tpu.memory_space<vmem>>, %arg6: memref<32x32xbf16, #tpu.memory_space<vmem>>, %arg7: memref<1x32xf32, #tpu.memory_space<vmem>>, %arg8: memref<32x128xbf16, #tpu.memory_space<vmem>>, %arg9: memref<1x128xf32, #tpu.memory_space<vmem>>, %arg10: memref<64x128xbf16, #tpu.memory_space<vmem>>) attributes {dimension_semantics = [#tpu.dimension_semantics<parallel>], iteration_bounds = array<i64: 1>, scalar_prefetch = 0 : i64, scratch_operands = 0 : i64, tpu.core_type = #tpu.core_type<tc>, window_params = [{transform_indices = @transform_0, window_bounds = array<i64: 64, 32>}, {pipeline_mode = #tpu.pipeline_mode<synchronous>, transform_indices = @transform_1, window_bounds = array<i64: 32, 32>}, {pipeline_mode = #tpu.pipeline_mode<synchronous>, transform_indices = @transform_2, window_bounds = array<i64: 1, 32>}, {pipeline_mode = #tpu.pipeline_mode<synchronous>, transform_indices = @transform_3, window_bounds = array<i64: 32, 32>}, {pipeline_mode = #tpu.pipeline_mode<synchronous>, transform_indices = @transform_4, window_bounds = array<i64: 1, 32>}, {pipeline_mode = #tpu.pipeline_mode<synchronous>, transform_indices = @transform_5, window_bounds = array<i64: 32, 32>}, {pipeline_mode = #tpu.pipeline_mode<synchronous>, transform_indices = @transform_6, window_bounds = array<i64: 1, 32>}, {pipeline_mode = #tpu.pipeline_mode<synchronous>, transform_indices = @transform_7, window_bounds = array<i64: 32, 128>}, {pipeline_mode = #tpu.pipeline_mode<synchronous>, transform_indices = @transform_8, window_bounds = array<i64: 1, 128>}, {transform_indices = @transform_9, window_bounds = array<i64: 64, 128>}]} {
    %c0 = arith.constant 0 : index
    %c0_0 = arith.constant 0 : index
    %0 = vector.load %arg1[%c0, %c0_0] : memref<64x32xf32, #tpu.memory_space<vmem>>, vector<64x32xf32>
    %1 = arith.truncf %0 : vector<64x32xf32> to vector<64x32xbf16>
    %c0_1 = arith.constant 0 : index
    %c0_2 = arith.constant 0 : index
    %2 = vector.load %arg2[%c0_1, %c0_2] : memref<32x32xbf16, #tpu.memory_space<vmem>>, vector<32x32xbf16>
    %cst = arith.constant dense<0.000000e+00> : vector<64x32xf32>
    %3 = tpu.matmul %1, %2, %cst {dimension_numbers = #tpu.dot_dimension_numbers<[1], [0], [0], [1], [0, 0, 1, 1], [], []>} : vector<64x32xbf16>, vector<32x32xbf16>, vector<64x32xf32> -> vector<64x32xf32>
    %c0_3 = arith.constant 0 : index
    %c0_4 = arith.constant 0 : index
    %4 = vector.load %arg3[%c0_3, %c0_4] : memref<1x32xf32, #tpu.memory_space<vmem>>, vector<1x32xf32>
    %5 = vector.broadcast %4 : vector<1x32xf32> to vector<64x32xf32>
    %6 = arith.addf %3, %5 : vector<64x32xf32>
    %cst_5 = arith.constant 0.000000e+00 : f32
    %7 = vector.broadcast %cst_5 : f32 to vector<64x32xf32>
    %8 = arith.maximumf %6, %7 : vector<64x32xf32>
    %9 = arith.truncf %8 : vector<64x32xf32> to vector<64x32xbf16>
    %c0_6 = arith.constant 0 : index
    %c0_7 = arith.constant 0 : index
    %10 = vector.load %arg4[%c0_6, %c0_7] : memref<32x32xbf16, #tpu.memory_space<vmem>>, vector<32x32xbf16>
    %cst_8 = arith.constant dense<0.000000e+00> : vector<64x32xf32>
    %11 = tpu.matmul %9, %10, %cst_8 {dimension_numbers = #tpu.dot_dimension_numbers<[1], [0], [0], [1], [0, 0, 1, 1], [], []>} : vector<64x32xbf16>, vector<32x32xbf16>, vector<64x32xf32> -> vector<64x32xf32>
    %c0_9 = arith.constant 0 : index
    %c0_10 = arith.constant 0 : index
    %12 = vector.load %arg5[%c0_9, %c0_10] : memref<1x32xf32, #tpu.memory_space<vmem>>, vector<1x32xf32>
    %13 = vector.broadcast %12 : vector<1x32xf32> to vector<64x32xf32>
    %14 = arith.addf %11, %13 : vector<64x32xf32>
    %cst_11 = arith.constant 0.000000e+00 : f32
    %15 = vector.broadcast %cst_11 : f32 to vector<64x32xf32>
    %16 = arith.maximumf %14, %15 : vector<64x32xf32>
    %17 = arith.truncf %16 : vector<64x32xf32> to vector<64x32xbf16>
    %c0_12 = arith.constant 0 : index
    %c0_13 = arith.constant 0 : index
    %18 = vector.load %arg6[%c0_12, %c0_13] : memref<32x32xbf16, #tpu.memory_space<vmem>>, vector<32x32xbf16>
    %cst_14 = arith.constant dense<0.000000e+00> : vector<64x32xf32>
    %19 = tpu.matmul %17, %18, %cst_14 {dimension_numbers = #tpu.dot_dimension_numbers<[1], [0], [0], [1], [0, 0, 1, 1], [], []>} : vector<64x32xbf16>, vector<32x32xbf16>, vector<64x32xf32> -> vector<64x32xf32>
    %c0_15 = arith.constant 0 : index
    %c0_16 = arith.constant 0 : index
    %20 = vector.load %arg7[%c0_15, %c0_16] : memref<1x32xf32, #tpu.memory_space<vmem>>, vector<1x32xf32>
    %21 = vector.broadcast %20 : vector<1x32xf32> to vector<64x32xf32>
    %22 = arith.addf %19, %21 : vector<64x32xf32>
    %cst_17 = arith.constant 0.000000e+00 : f32
    %23 = vector.broadcast %cst_17 : f32 to vector<64x32xf32>
    %24 = arith.maximumf %22, %23 : vector<64x32xf32>
    %25 = arith.truncf %24 : vector<64x32xf32> to vector<64x32xbf16>
    %c0_18 = arith.constant 0 : index
    %c0_19 = arith.constant 0 : index
    %26 = vector.load %arg8[%c0_18, %c0_19] : memref<32x128xbf16, #tpu.memory_space<vmem>>, vector<32x128xbf16>
    %cst_20 = arith.constant dense<0.000000e+00> : vector<64x128xf32>
    %27 = tpu.matmul %25, %26, %cst_20 {dimension_numbers = #tpu.dot_dimension_numbers<[1], [0], [0], [1], [0, 0, 1, 1], [], []>} : vector<64x32xbf16>, vector<32x128xbf16>, vector<64x128xf32> -> vector<64x128xf32>
    %c0_21 = arith.constant 0 : index
    %c0_22 = arith.constant 0 : index
    %28 = vector.load %arg9[%c0_21, %c0_22] : memref<1x128xf32, #tpu.memory_space<vmem>>, vector<1x128xf32>
    %29 = vector.broadcast %28 : vector<1x128xf32> to vector<64x128xf32>
    %30 = arith.addf %27, %29 : vector<64x128xf32>
    %cst_23 = arith.constant dense<0xFF800000> : vector<64xf32>
    %31 = vector.multi_reduction <maximumf>, %30, %cst_23 [1] : vector<64x128xf32> to vector<64xf32>
    %32 = vector.shape_cast %31 : vector<64xf32> to vector<64x1xf32>
    %33 = vector.broadcast %32 : vector<64x1xf32> to vector<64x128xf32>
    %34 = arith.subf %30, %33 : vector<64x128xf32>
    %35 = math.exp %34 : vector<64x128xf32>
    %cst_24 = arith.constant dense<0.000000e+00> : vector<64xf32>
    %36 = vector.multi_reduction <add>, %35, %cst_24 [1] : vector<64x128xf32> to vector<64xf32>
    %37 = vector.shape_cast %36 : vector<64xf32> to vector<64x1xf32>
    %38 = math.log %37 : vector<64x1xf32>
    %39 = vector.broadcast %38 : vector<64x1xf32> to vector<64x128xf32>
    %40 = arith.subf %34, %39 : vector<64x128xf32>
    %41 = arith.truncf %40 : vector<64x128xf32> to vector<64x128xbf16>
    %c0_25 = arith.constant 0 : index
    %c0_26 = arith.constant 0 : index
    %42 = vector.load %arg10[%c0_25, %c0_26] : memref<64x128xbf16, #tpu.memory_space<vmem>>, vector<64x128xbf16>
    tpu.vector_store %arg10[%c0_25, %c0_26], %41 {strides = array<i32>} : memref<64x128xbf16, #tpu.memory_space<vmem>>, vector<64x128xbf16>,
    return
  }
  func.func @transform_0(%arg0: i32) -> (i32, i32) {
    %c0_i32 = arith.constant 0 : i32
    %c0_i32_0 = arith.constant 0 : i32
    return %arg0, %c0_i32 : i32, i32
  }
  func.func @transform_1(%arg0: i32) -> (i32, i32) {
    %c0_i32 = arith.constant 0 : i32
    %c0_i32_0 = arith.constant 0 : i32
    %c0_i32_1 = arith.constant 0 : i32
    return %c0_i32, %c0_i32_0 : i32, i32
  }
  func.func @transform_2(%arg0: i32) -> (i32, i32) {
    %c0_i32 = arith.constant 0 : i32
    %c0_i32_0 = arith.constant 0 : i32
    %c0_i32_1 = arith.constant 0 : i32
    return %c0_i32, %c0_i32_0 : i32, i32
  }
  func.func @transform_3(%arg0: i32) -> (i32, i32) {
    %c0_i32 = arith.constant 0 : i32
    %c0_i32_0 = arith.constant 0 : i32
    %c0_i32_1 = arith.constant 0 : i32
    return %c0_i32, %c0_i32_0 : i32, i32
  }
  func.func @transform_4(%arg0: i32) -> (i32, i32) {
    %c0_i32 = arith.constant 0 : i32
    %c0_i32_0 = arith.constant 0 : i32
    %c0_i32_1 = arith.constant 0 : i32
    return %c0_i32, %c0_i32_0 : i32, i32
  }
  func.func @transform_5(%arg0: i32) -> (i32, i32) {
    %c0_i32 = arith.constant 0 : i32
    %c0_i32_0 = arith.constant 0 : i32
    %c0_i32_1 = arith.constant 0 : i32
    return %c0_i32, %c0_i32_0 : i32, i32
  }
  func.func @transform_6(%arg0: i32) -> (i32, i32) {
    %c0_i32 = arith.constant 0 : i32
    %c0_i32_0 = arith.constant 0 : i32
    %c0_i32_1 = arith.constant 0 : i32
    return %c0_i32, %c0_i32_0 : i32, i32
  }
  func.func @transform_7(%arg0: i32) -> (i32, i32) {
    %c0_i32 = arith.constant 0 : i32
    %c0_i32_0 = arith.constant 0 : i32
    %c0_i32_1 = arith.constant 0 : i32
    return %c0_i32, %c0_i32_0 : i32, i32
  }
  func.func @transform_8(%arg0: i32) -> (i32, i32) {
    %c0_i32 = arith.constant 0 : i32
    %c0_i32_0 = arith.constant 0 : i32
    %c0_i32_1 = arith.constant 0 : i32
    return %c0_i32, %c0_i32_0 : i32, i32
  }
  func.func @transform_9(%arg0: i32) -> (i32, i32) {
    %c0_i32 = arith.constant 0 : i32
    %c0_i32_0 = arith.constant 0 : i32
    return %arg0, %c0_i32 : i32, i32
  }
}

module attributes {stable_mosaic.version = 11 : i64} {
  func.func @fcnet_kernel(%arg0: i32, %arg1: memref<64x32xf32, #tpu.memory_space<vmem>>, %arg2: memref<32x32xbf16, #tpu.memory_space<vmem>>, %arg3: memref<1x32xf32, #tpu.memory_space<vmem>>, %arg4: memref<32x32xbf16, #tpu.memory_space<vmem>>, %arg5: memref<1x32xf32, #tpu.memory_space<vmem>>, %arg6: memref<32x32xbf16, #tpu.memory_space<vmem>>, %arg7: memref<1x32xf32, #tpu.memory_space<vmem>>, %arg8: memref<32x128xbf16, #tpu.memory_space<vmem>>, %arg9: memref<1x128xf32, #tpu.memory_space<vmem>>, %arg10: memref<64x128xbf16, #tpu.memory_space<vmem>>) attributes {dimension_semantics = [#tpu.dimension_semantics<parallel>], iteration_bounds = array<i64: 1>, scalar_prefetch = 0 : i64, scratch_operands = 0 : i64, tpu.core_type = #tpu.core_type<tc>, window_params = [{transform_indices = @transform_0, window_bounds = array<i64: 64, 32>}, {pipeline_mode = #tpu.pipeline_mode<synchronous>, transform_indices = @transform_1, window_bounds = array<i64: 32, 32>}, {pipeline_mode = #tpu.pipeline_mode<synchronous>, transform_indices = @transform_2, window_bounds = array<i64: 1, 32>}, {pipeline_mode = #tpu.pipeline_mode<synchronous>, transform_indices = @transform_3, window_bounds = array<i64: 32, 32>}, {pipeline_mode = #tpu.pipeline_mode<synchronous>, transform_indices = @transform_4, window_bounds = array<i64: 1, 32>}, {pipeline_mode = #tpu.pipeline_mode<synchronous>, transform_indices = @transform_5, window_bounds = array<i64: 32, 32>}, {pipeline_mode = #tpu.pipeline_mode<synchronous>, transform_indices = @transform_6, window_bounds = array<i64: 1, 32>}, {pipeline_mode = #tpu.pipeline_mode<synchronous>, transform_indices = @transform_7, window_bounds = array<i64: 32, 128>}, {pipeline_mode = #tpu.pipeline_mode<synchronous>, transform_indices = @transform_8, window_bounds = array<i64: 1, 128>}, {transform_indices = @transform_9, window_bounds = array<i64: 64, 128>}]} {
    %c0 = arith.constant 0 : index
    %c0_0 = arith.constant 0 : index
    %0 = vector.load %arg1[%c0, %c0_0] : memref<64x32xf32, #tpu.memory_space<vmem>>, vector<64x32xf32>
    %1 = arith.truncf %0 : vector<64x32xf32> to vector<64x32xbf16>
    %c0_1 = arith.constant 0 : index
    %c0_2 = arith.constant 0 : index
    %2 = vector.load %arg2[%c0_1, %c0_2] : memref<32x32xbf16, #tpu.memory_space<vmem>>, vector<32x32xbf16>
    %cst = arith.constant dense<0.000000e+00> : vector<64x32xf32>
    %3 = tpu.matmul %1, %2, %cst {dimension_numbers = #tpu.dot_dimension_numbers<[1], [0], [0], [1], [0, 0, 1, 1], [], []>} : vector<64x32xbf16>, vector<32x32xbf16>, vector<64x32xf32> -> vector<64x32xf32>
    %c0_3 = arith.constant 0 : index
    %c0_4 = arith.constant 0 : index
    %4 = vector.load %arg3[%c0_3, %c0_4] : memref<1x32xf32, #tpu.memory_space<vmem>>, vector<1x32xf32>
    %5 = vector.broadcast %4 : vector<1x32xf32> to vector<64x32xf32>
    %6 = arith.addf %3, %5 : vector<64x32xf32>
    %cst_5 = arith.constant 0.000000e+00 : f32
    %7 = vector.broadcast %cst_5 : f32 to vector<64x32xf32>
    %8 = arith.maximumf %6, %7 : vector<64x32xf32>
    %9 = arith.truncf %8 : vector<64x32xf32> to vector<64x32xbf16>
    %c0_6 = arith.constant 0 : index
    %c0_7 = arith.constant 0 : index
    %10 = vector.load %arg4[%c0_6, %c0_7] : memref<32x32xbf16, #tpu.memory_space<vmem>>, vector<32x32xbf16>
    %cst_8 = arith.constant dense<0.000000e+00> : vector<64x32xf32>
    %11 = tpu.matmul %9, %10, %cst_8 {dimension_numbers = #tpu.dot_dimension_numbers<[1], [0], [0], [1], [0, 0, 1, 1], [], []>} : vector<64x32xbf16>, vector<32x32xbf16>, vector<64x32xf32> -> vector<64x32xf32>
    %c0_9 = arith.constant 0 : index
    %c0_10 = arith.constant 0 : index
    %12 = vector.load %arg5[%c0_9, %c0_10] : memref<1x32xf32, #tpu.memory_space<vmem>>, vector<1x32xf32>
    %13 = vector.broadcast %12 : vector<1x32xf32> to vector<64x32xf32>
    %14 = arith.addf %11, %13 : vector<64x32xf32>
    %cst_11 = arith.constant 0.000000e+00 : f32
    %15 = vector.broadcast %cst_11 : f32 to vector<64x32xf32>
    %16 = arith.maximumf %14, %15 : vector<64x32xf32>
    %17 = arith.truncf %16 : vector<64x32xf32> to vector<64x32xbf16>
    %c0_12 = arith.constant 0 : index
    %c0_13 = arith.constant 0 : index
    %18 = vector.load %arg6[%c0_12, %c0_13] : memref<32x32xbf16, #tpu.memory_space<vmem>>, vector<32x32xbf16>
    %cst_14 = arith.constant dense<0.000000e+00> : vector<64x32xf32>
    %19 = tpu.matmul %17, %18, %cst_14 {dimension_numbers = #tpu.dot_dimension_numbers<[1], [0], [0], [1], [0, 0, 1, 1], [], []>} : vector<64x32xbf16>, vector<32x32xbf16>, vector<64x32xf32> -> vector<64x32xf32>
    %c0_15 = arith.constant 0 : index
    %c0_16 = arith.constant 0 : index
    %20 = vector.load %arg7[%c0_15, %c0_16] : memref<1x32xf32, #tpu.memory_space<vmem>>, vector<1x32xf32>
    %21 = vector.broadcast %20 : vector<1x32xf32> to vector<64x32xf32>
    %22 = arith.addf %19, %21 : vector<64x32xf32>
    %cst_17 = arith.constant 0.000000e+00 : f32
    %23 = vector.broadcast %cst_17 : f32 to vector<64x32xf32>
    %24 = arith.maximumf %22, %23 : vector<64x32xf32>
    %25 = arith.truncf %24 : vector<64x32xf32> to vector<64x32xbf16>
    %c0_18 = arith.constant 0 : index
    %c0_19 = arith.constant 0 : index
    %26 = vector.load %arg8[%c0_18, %c0_19] : memref<32x128xbf16, #tpu.memory_space<vmem>>, vector<32x128xbf16>
    %cst_20 = arith.constant dense<0.000000e+00> : vector<64x128xf32>
    %27 = tpu.matmul %25, %26, %cst_20 {dimension_numbers = #tpu.dot_dimension_numbers<[1], [0], [0], [1], [0, 0, 1, 1], [], []>} : vector<64x32xbf16>, vector<32x128xbf16>, vector<64x128xf32> -> vector<64x128xf32>
    %c0_21 = arith.constant 0 : index
    %c0_22 = arith.constant 0 : index
    %28 = vector.load %arg9[%c0_21, %c0_22] : memref<1x128xf32, #tpu.memory_space<vmem>>, vector<1x128xf32>
    %29 = vector.broadcast %28 : vector<1x128xf32> to vector<64x128xf32>
    %30 = arith.addf %27, %29 : vector<64x128xf32>
    %cst_23 = arith.constant dense<0xFF800000> : vector<64xf32>
    %31 = vector.multi_reduction <maximumf>, %30, %cst_23 [1] : vector<64x128xf32> to vector<64xf32>
    %32 = vector.shape_cast %31 : vector<64xf32> to vector<64x1xf32>
    %33 = vector.broadcast %32 : vector<64x1xf32> to vector<64x128xf32>
    %34 = arith.subf %30, %33 : vector<64x128xf32>
    %35 = math.exp %34 : vector<64x128xf32>
    %cst_24 = arith.constant dense<0.000000e+00> : vector<64xf32>
    %36 = vector.multi_reduction <add>, %35, %cst_24 [1] : vector<64x128xf32> to vector<64xf32>
    %37 = vector.shape_cast %36 : vector<64xf32> to vector<64x1xf32>
    %38 = math.log %37 : vector<64x1xf32>
    %39 = vector.broadcast %38 : vector<64x1xf32> to vector<64x128xf32>
    %40 = arith.subf %34, %39 : vector<64x128xf32>
    %41 = arith.truncf %40 : vector<64x128xf32> to vector<64x128xbf16>
    %c0_25 = arith.constant 0 : index
    %c0_26 = arith.constant 0 : index
    %42 = vector.load %arg10[%c0_25, %c0_26] : memref<64x128xbf16, #tpu.memory_space<vmem>>, vector<64x128xbf16>
    tpu.vector_store %arg10[%c0_25, %c0_26], %41 {strides = array<i32>} : memref<64x128xbf16, #tpu.memory_space<vmem>>, vector<64x128xbf16>,
    return
  }
  func.func @transform_0(%arg0: i32) -> (i32, i32) {
    %c0_i32 = arith.constant 0 : i32
    %c0_i32_0 = arith.constant 0 : i32
    return %arg0, %c0_i32 : i32, i32
  }
  func.func @transform_1(%arg0: i32) -> (i32, i32) {
    %c0_i32 = arith.constant 0 : i32
    %c0_i32_0 = arith.constant 0 : i32
    %c0_i32_1 = arith.constant 0 : i32
    return %c0_i32, %c0_i32_0 : i32, i32
  }
  func.func @transform_2(%arg0: i32) -> (i32, i32) {
    %c0_i32 = arith.constant 0 : i32
    %c0_i32_0 = arith.constant 0 : i32
    %c0_i32_1 = arith.constant 0 : i32
    return %c0_i32, %c0_i32_0 : i32, i32
  }
  func.func @transform_3(%arg0: i32) -> (i32, i32) {
    %c0_i32 = arith.constant 0 : i32
    %c0_i32_0 = arith.constant 0 : i32
    %c0_i32_1 = arith.constant 0 : i32
    return %c0_i32, %c0_i32_0 : i32, i32
  }
  func.func @transform_4(%arg0: i32) -> (i32, i32) {
    %c0_i32 = arith.constant 0 : i32
    %c0_i32_0 = arith.constant 0 : i32
    %c0_i32_1 = arith.constant 0 : i32
    return %c0_i32, %c0_i32_0 : i32, i32
  }
  func.func @transform_5(%arg0: i32) -> (i32, i32) {
    %c0_i32 = arith.constant 0 : i32
    %c0_i32_0 = arith.constant 0 : i32
    %c0_i32_1 = arith.constant 0 : i32
    return %c0_i32, %c0_i32_0 : i32, i32
  }
  func.func @transform_6(%arg0: i32) -> (i32, i32) {
    %c0_i32 = arith.constant 0 : i32
    %c0_i32_0 = arith.constant 0 : i32
    %c0_i32_1 = arith.constant 0 : i32
    return %c0_i32, %c0_i32_0 : i32, i32
  }
  func.func @transform_7(%arg0: i32) -> (i32, i32) {
    %c0_i32 = arith.constant 0 : i32
    %c0_i32_0 = arith.constant 0 : i32
    %c0_i32_1 = arith.constant 0 : i32
    return %c0_i32, %c0_i32_0 : i32, i32
  }
  func.func @transform_8(%arg0: i32) -> (i32, i32) {
    %c0_i32 = arith.constant 0 : i32
    %c0_i32_0 = arith.constant 0 : i32
    %c0_i32_1 = arith.constant 0 : i32
    return %c0_i32, %c0_i32_0 : i32, i32
  }
  func.func @transform_9(%arg0: i32) -> (i32, i32) {
    %c0_i32 = arith.constant 0 : i32
    %c0_i32_0 = arith.constant 0 : i32
    return %arg0, %c0_i32 : i32, i32
  }
}

</mosaic_0001>

<bundles_post_ra>
// kernel: tpu_custom_call.1
= control target key start
LH: loop header
LB: loop body
LE: loop exit
PB: predicated region body
PF: predicated region fallthrough
CT: control target
= control target key end

     0   :  { %s721_s0 = inlined_call_operand.vmem [shape: f32[64,32], index: 0, kind: input, shape index: {}]   ;;  %s722_s1 = inlined_call_operand.vmem [shape: bf16[32,32], index: 1, kind: input, shape index: {}]   ;;  %s723_s2 = inlined_call_operand.vmem [shape: f32[1,32], index: 2, kind: input, shape index: {}]   ;;  %s724_s3 = inlined_call_operand.vmem [shape: bf16[32,32], index: 3, kind: input, shape index: {}]   ;;  %s725_s4 = inlined_call_operand.vmem [shape: f32[1,32], index: 4, kind: input, shape index: {}]   ;;  %s726_s5 = inlined_call_operand.vmem [shape: bf16[32,32], index: 5, kind: input, shape index: {}]   ;;  %s727_s6 = inlined_call_operand.vmem [shape: f32[1,32], index: 6, kind: input, shape index: {}]   ;;  %s728_s7 = inlined_call_operand.vmem [shape: bf16[32,128], index: 7, kind: input, shape index: {}]   ;;  %s729_s8 = inlined_call_operand.vmem [shape: f32[1,128], index: 8, kind: input, shape index: {}]   ;;  %s730_s9 = inlined_call_operand.hbm [shape: bf16[64,128], index: 9, kind: output, shape index: {}]  }
   0x1   :  { %v490_v0 = vld [vmem:[%s722_s1 + $0x8] sm:$0xff]  ;;  %v489_v1 = vld [vmem:[%s722_s1] sm:$0xff] }
   0x2   :  { %85 = vmatpush.bf16.msra.mxu0 %v490_v0  ;;  %v34_v2 = vld [vmem:[%s721_s0] sm:$0xff]  ;;  %v35_v3 = vld [vmem:[%s721_s0 + $0x8] sm:$0xff] }
   0x3   :  { %14 = vsyncpa [#allocation3], 0  ;;  %v42_v4 = vpack.c.bf16 %v35_v3, %v34_v2  ;;  %vm66_vm0 = vcmask 261120   ;;  %v36_v5 = vld [vmem:[%s721_s0 + $0x10] sm:$0xff]  ;;  %v37_v6 = vld [vmem:[%s721_s0 + $0x18] sm:$0xff]  ;;  %s429_s22 = sshll.u32 %s730_s9, 4  ;;  %s430_s22 = int_to_ptr.hbm [resolvable:$true] %s429_s22 }
   0x4   :  { %v43_v7 = vpack.c.bf16 %v37_v6, %v36_v5  ;;  %v38_v8 = vld [vmem:[%s721_s0 + $0x20] sm:$0xff]  ;;  %v39_v9 = vld [vmem:[%s721_s0 + $0x28] sm:$0xff]  ;;  %v40_v11 = vld [vmem:[%s721_s0 + $0x30] sm:$0xff]  ;;  %s586_s23 = smov 64   ;;  %s587_s24 = smov 4  }
   0x5   :  { %v44_v10 = vpack.c.bf16 %v39_v9, %v38_v8  ;;  %v41_v12 = vld [vmem:[%s721_s0 + $0x38] sm:$0xff]  ;;  %v492_v14 = vld [vmem:[%s724_s3 + $0x8] sm:$0xff]  ;;  %v491_v15 = vld [vmem:[%s724_s3] sm:$0xff] }
   0x6   :  { %86 = vmatpush.bf16.msra.mxu0 %v489_v1  ;;  %v45_v13 = vpack.c.bf16 %v41_v12, %v40_v11  ;;  %158 = vmatpush.bf16.msra.mxu1 %v492_v14  ;;  %v523_v17 = vld [vmem:[%s723_s2] ss:$0 sm:$0xff]  ;;  %v494_v45 = vld [vmem:[%s726_s5 + $0x8] sm:$0xff] }
   0x7   :  { %231 = vmatpush.bf16.msra.mxu2 %v494_v45  ;;  %v493_v46 = vld [vmem:[%s726_s5] sm:$0xff]  ;;  %v496_v12 = vld [vmem:[%s728_s7 + $0x8] sm:$0xff] }
   0x8   :  { %v524_v48 = vld [vmem:[%s725_s4] ss:$0 sm:$0xff]  ;;  %304 = vmatpush.bf16.msra.mxu3 %v496_v12 }
   0x9   :  { %449 = vmatmul.msk.bf16.vlgmr.msra.gmra.mxu0 %vm66_vm0, %v42_v4 }
   0xa   :  { %159 = vmatpush.bf16.msra.mxu1 %v491_v15  ;;  %v525_v15 = vld [vmem:[%s727_s6] ss:$0 sm:$0xff] }
   0xb   :  { %232 = vmatpush.bf16.msra.mxu2 %v493_v46 }
  0x19   :  { %450 = vmatmul.msk.bf16.gmra.mxu0 %vm66_vm0, %v43_v7 }
  0x29   :  { %451 = vmatmul.msk.bf16.gmra.mxu0 %vm66_vm0, %v44_v10 }
  0x39   :  { %452 = vmatmul.msk.bf16.gmra.mxu0 %vm66_vm0, %v45_v13  ;;  %v495_v13 = vld [vmem:[%s728_s7] sm:$0xff] }
  0x3a   :  { %305 = vmatpush.bf16.msra.mxu3 %v495_v13 }
  0x86   :  { %v88_v16 = vpop.f32.mrf.mxu0 }
  0x87   :  { %v89_v18 = vadd.f32 %v523_v17, %v88_v16 }
  0x89   :  { %v108_v21 = vmax.f32 %v89_v18, 0.0 }
  0x8e   :  { %v90_v19 = vpop.f32.mrf.mxu0 }
  0x8f   :  { %v91_v20 = vadd.f32 %v523_v17, %v90_v19 }
  0x91   :  { %v109_v22 = vmax.f32 %v91_v20, 0.0 }
  0x93   :  { %v116_v23 = vpack.c.bf16 %v109_v22, %v108_v21 }
  0x95   :  { %461 = vmatmul.msk.bf16.vlgmr.msra.gmra.mxu1 %vm66_vm0, %v116_v23 }
  0x96   :  { %v93_v24 = vpop.f32.mrf.mxu0 }
  0x97   :  { %v94_v25 = vadd.f32 %v523_v17, %v93_v24 }
  0x99   :  { %v110_v28 = vmax.f32 %v94_v25, 0.0 }
  0x9e   :  { %v95_v26 = vpop.f32.mrf.mxu0 }
  0x9f   :  { %v96_v27 = vadd.f32 %v523_v17, %v95_v26 }
  0xa1   :  { %v111_v29 = vmax.f32 %v96_v27, 0.0 }
  0xa3   :  { %v117_v30 = vpack.c.bf16 %v111_v29, %v110_v28 }
  0xa5   :  { %462 = vmatmul.msk.bf16.gmra.mxu1 %vm66_vm0, %v117_v30 }
  0xa6   :  { %v98_v31 = vpop.f32.mrf.mxu0 }
  0xa7   :  { %v99_v32 = vadd.f32 %v523_v17, %v98_v31 }
  0xa9   :  { %v112_v35 = vmax.f32 %v99_v32, 0.0 }
  0xae   :  { %v100_v33 = vpop.f32.mrf.mxu0 }
  0xaf   :  { %v101_v34 = vadd.f32 %v523_v17, %v100_v33 }
  0xb1   :  { %v113_v36 = vmax.f32 %v101_v34, 0.0 }
  0xb3   :  { %v118_v37 = vpack.c.bf16 %v113_v36, %v112_v35 }
  0xb5   :  { %463 = vmatmul.msk.bf16.gmra.mxu1 %vm66_vm0, %v118_v37 }
  0xb6   :  { %v103_v38 = vpop.f32.mrf.mxu0 }
  0xb7   :  { %v104_v39 = vadd.f32 %v523_v17, %v103_v38 }
  0xb9   :  { %v114_v42 = vmax.f32 %v104_v39, 0.0 }
  0xbe   :  { %v105_v40 = vpop.f32.mrf.mxu0 }
  0xbf   :  { %v106_v41 = vadd.f32 %v523_v17, %v105_v40 }
  0xc1   :  { %v115_v43 = vmax.f32 %v106_v41, 0.0 }
  0xc3   :  { %v119_v44 = vpack.c.bf16 %v115_v43, %v114_v42  ;;  %v526_v43 = vld [vmem:[%s729_s8] ss:$0 sm:$0xff]  ;;  %s585_s8 = smov [#allocation2]  }
  0xc4   :  { %s427_s19 = sshll.u32 %s585_s8, 4  ;;  %s428_s19 = int_to_ptr.vmem [resolvable:$true] %s427_s19 }
  0xc5   :  { %464 = vmatmul.msk.bf16.gmra.mxu1 %vm66_vm0, %v119_v44 }
 0x112   :  { %v161_v47 = vpop.f32.mrf.mxu1 }
 0x113   :  { %v162_v49 = vadd.f32 %v524_v48, %v161_v47 }
 0x115   :  { %v181_v52 = vmax.f32 %v162_v49, 0.0 }
 0x11a   :  { %v163_v50 = vpop.f32.mrf.mxu1 }
 0x11b   :  { %v164_v51 = vadd.f32 %v524_v48, %v163_v50 }
 0x11d   :  { %v182_v53 = vmax.f32 %v164_v51, 0.0 }
 0x11f   :  { %v189_v54 = vpack.c.bf16 %v182_v53, %v181_v52 }
 0x121   :  { %473 = vmatmul.msk.bf16.vlgmr.msra.gmra.mxu2 %vm66_vm0, %v189_v54 }
 0x122   :  { %v166_v55 = vpop.f32.mrf.mxu1 }
 0x123   :  { %v167_v56 = vadd.f32 %v524_v48, %v166_v55 }
 0x125   :  { %v183_v59 = vmax.f32 %v167_v56, 0.0 }
 0x12a   :  { %v168_v57 = vpop.f32.mrf.mxu1 }
 0x12b   :  { %v169_v58 = vadd.f32 %v524_v48, %v168_v57 }
 0x12d   :  { %v184_v60 = vmax.f32 %v169_v58, 0.0 }
 0x12f   :  { %v190_v61 = vpack.c.bf16 %v184_v60, %v183_v59 }
 0x131   :  { %474 = vmatmul.msk.bf16.gmra.mxu2 %vm66_vm0, %v190_v61 }
 0x132   :  { %v171_v62 = vpop.f32.mrf.mxu1 }
 0x133   :  { %v172_v63 = vadd.f32 %v524_v48, %v171_v62 }
 0x135   :  { %v185_v2 = vmax.f32 %v172_v63, 0.0 }
 0x13a   :  { %v173_v0 = vpop.f32.mrf.mxu1 }
 0x13b   :  { %v174_v1 = vadd.f32 %v524_v48, %v173_v0 }
 0x13d   :  { %v186_v3 = vmax.f32 %v174_v1, 0.0 }
 0x13f   :  { %v191_v4 = vpack.c.bf16 %v186_v3, %v185_v2 }
 0x141   :  { %475 = vmatmul.msk.bf16.gmra.mxu2 %vm66_vm0, %v191_v4 }
 0x142   :  { %v176_v5 = vpop.f32.mrf.mxu1 }
 0x143   :  { %v177_v6 = vadd.f32 %v524_v48, %v176_v5 }
 0x145   :  { %v187_v9 = vmax.f32 %v177_v6, 0.0 }
 0x14a   :  { %v178_v7 = vpop.f32.mrf.mxu1 }
 0x14b   :  { %v179_v8 = vadd.f32 %v524_v48, %v178_v7 }
 0x14d   :  { %v188_v10 = vmax.f32 %v179_v8, 0.0 }
 0x14f   :  { %v192_v11 = vpack.c.bf16 %v188_v10, %v187_v9 }
 0x151   :  { %476 = vmatmul.msk.bf16.gmra.mxu2 %vm66_vm0, %v192_v11 }
 0x1a4   :  { %v234_v14 = vpop.f32.mrf.mxu2 }
 0x1a5   :  { %v235_v16 = vadd.f32 %v525_v15, %v234_v14 }
 0x1a7   :  { %v254_v19 = vmax.f32 %v235_v16, 0.0 }
 0x1ac   :  { %v236_v17 = vpop.f32.mrf.mxu2 }
 0x1ad   :  { %v237_v18 = vadd.f32 %v525_v15, %v236_v17 }
 0x1af   :  { %v255_v20 = vmax.f32 %v237_v18, 0.0 }
 0x1b1   :  { %v262_v21 = vpack.c.bf16 %v255_v20, %v254_v19 }
 0x1b3   :  { %485 = vmatmul.msk.bf16.vlgmr.msra.gmra.mxu3 %vm66_vm0, %v262_v21 }
 0x1b4   :  { %v239_v22 = vpop.f32.mrf.mxu2 }
 0x1b5   :  { %v240_v23 = vadd.f32 %v525_v15, %v239_v22 }
 0x1b7   :  { %v256_v26 = vmax.f32 %v240_v23, 0.0 }
 0x1bc   :  { %v241_v24 = vpop.f32.mrf.mxu2 }
 0x1bd   :  { %v242_v25 = vadd.f32 %v525_v15, %v241_v24 }
 0x1bf   :  { %v257_v27 = vmax.f32 %v242_v25, 0.0 }
 0x1c1   :  { %v263_v28 = vpack.c.bf16 %v257_v27, %v256_v26 }
 0x1c3   :  { %486 = vmatmul.msk.bf16.gmra.mxu3 %vm66_vm0, %v263_v28 }
 0x1c4   :  { %v244_v29 = vpop.f32.mrf.mxu2 }
 0x1c5   :  { %v245_v30 = vadd.f32 %v525_v15, %v244_v29 }
 0x1c7   :  { %v258_v33 = vmax.f32 %v245_v30, 0.0 }
 0x1cc   :  { %v246_v31 = vpop.f32.mrf.mxu2 }
 0x1cd   :  { %v247_v32 = vadd.f32 %v525_v15, %v246_v31 }
 0x1cf   :  { %v259_v34 = vmax.f32 %v247_v32, 0.0 }
 0x1d1   :  { %v264_v35 = vpack.c.bf16 %v259_v34, %v258_v33 }
 0x1d3   :  { %487 = vmatmul.msk.bf16.gmra.mxu3 %vm66_vm0, %v264_v35 }
 0x1d4   :  { %v249_v36 = vpop.f32.mrf.mxu2 }
 0x1d5   :  { %v250_v37 = vadd.f32 %v525_v15, %v249_v36 }
 0x1d7   :  { %v260_v40 = vmax.f32 %v250_v37, 0.0 }
 0x1dc   :  { %v251_v38 = vpop.f32.mrf.mxu2 }
 0x1dd   :  { %v252_v39 = vadd.f32 %v525_v15, %v251_v38 }
 0x1df   :  { %v261_v41 = vmax.f32 %v252_v39, 0.0 }
 0x1e1   :  { %v265_v42 = vpack.c.bf16 %v261_v41, %v260_v40 }
 0x1e3   :  { %488 = vmatmul.msk.bf16.gmra.mxu3 %vm66_vm0, %v265_v42 }
 0x236   :  { %v307_v44 = vpop.f32.mrf.mxu3 }
 0x237   :  { %v308_v45 = vadd.f32 %v526_v43, %v307_v44 }
 0x239   :  { %327 = vmax.xlane.f32.xlu0 %v308_v45 }
 0x23e   :  { %v309_v46 = vpop.f32.mrf.mxu3 }
 0x23f   :  { %v310_v47 = vadd.f32 %v526_v43, %v309_v46 }
 0x241   :  { %329 = vmax.xlane.f32.xlu0 %v310_v47 }
 0x246   :  { %v312_v48 = vpop.f32.mrf.mxu3 }
 0x247   :  { %v313_v49 = vadd.f32 %v526_v43, %v312_v48 }
 0x249   :  { %331 = vmax.xlane.f32.xlu1 %v313_v49 }
 0x24e   :  { %v314_v50 = vpop.f32.mrf.mxu3 }
 0x24f   :  { %v315_v51 = vadd.f32 %v526_v43, %v314_v50 }
 0x251   :  { %333 = vmax.xlane.f32.xlu1 %v315_v51 }
 0x256   :  { %v317_v52 = vpop.f32.mrf.mxu3 }
 0x257   :  { %v318_v53 = vadd.f32 %v526_v43, %v317_v52 }
 0x259   :  { %335 = vmax.xlane.f32.xlu2 %v318_v53 }
 0x25e   :  { %v319_v54 = vpop.f32.mrf.mxu3 }
 0x25f   :  { %v320_v55 = vadd.f32 %v526_v43, %v319_v54 }
 0x261   :  { %337 = vmax.xlane.f32.xlu2 %v320_v55 }
 0x266   :  { %v322_v56 = vpop.f32.mrf.mxu3 }
 0x267   :  { %v323_v57 = vadd.f32 %v526_v43, %v322_v56 }
 0x269   :  { %339 = vmax.xlane.f32.xlu0 %v323_v57 }
 0x26e   :  { %v324_v58 = vpop.f32.mrf.mxu3 }
 0x26f   :  { %v325_v59 = vadd.f32 %v526_v43, %v324_v58 }
 0x271   :  { %341 = vmax.xlane.f32.xlu1 %v325_v59 }
 0x2ac   :  { %v328_v60 = vpop.xlane.xlu0 %327 }
 0x2ad   :  { %v343_v61 = vsub.f32 %v308_v45, %v328_v60 }
 0x2af   :  { %v351_v62 = vmul.f32 1.442695, %v343_v61 }
 0x2b1   :  { %527 = vpow2.f32 %v351_v62 }
 0x2b4   :  { %v330_v63 = vpop.xlane.xlu0 %329 }
 0x2b5   :  { %v344_v0 = vsub.f32 %v310_v47, %v330_v63 }
 0x2b7   :  { %v528_v1 = vpop.eup %527  ;;  %v353_v2 = vmul.f32 1.442695, %v344_v0 }
 0x2b8   :  { %367 = vadd.xlane.f32.xlu2 %v528_v1 }
 0x2b9   :  { %529 = vpow2.f32 %v353_v2 }
 0x2bc   :  { %v332_v3 = vpop.xlane.xlu1 %331 }
 0x2bd   :  { %v345_v4 = vsub.f32 %v313_v49, %v332_v3 }
 0x2bf   :  { %v530_v5 = vpop.eup %529  ;;  %v355_v6 = vmul.f32 1.442695, %v345_v4 }
 0x2c0   :  { %369 = vadd.xlane.f32.xlu0 %v530_v5 }
 0x2c1   :  { %531 = vpow2.f32 %v355_v6 }
 0x2c4   :  { %v334_v7 = vpop.xlane.xlu1 %333 }
 0x2c5   :  { %v346_v8 = vsub.f32 %v315_v51, %v334_v7 }
 0x2c7   :  { %v532_v9 = vpop.eup %531  ;;  %v357_v10 = vmul.f32 1.442695, %v346_v8 }
 0x2c8   :  { %371 = vadd.xlane.f32.xlu1 %v532_v9 }
 0x2c9   :  { %533 = vpow2.f32 %v357_v10 }
 0x2cc   :  { %v336_v11 = vpop.xlane.xlu2 %335 }
 0x2cd   :  { %v347_v12 = vsub.f32 %v318_v53, %v336_v11 }
 0x2cf   :  { %v534_v13 = vpop.eup %533  ;;  %v359_v14 = vmul.f32 1.442695, %v347_v12 }
 0x2d0   :  { %373 = vadd.xlane.f32.xlu2 %v534_v13 }
 0x2d1   :  { %535 = vpow2.f32 %v359_v14 }
 0x2d4   :  { %v338_v15 = vpop.xlane.xlu2 %337 }
 0x2d5   :  { %v348_v16 = vsub.f32 %v320_v55, %v338_v15 }
 0x2d7   :  { %v536_v17 = vpop.eup %535  ;;  %v361_v18 = vmul.f32 1.442695, %v348_v16 }
 0x2d8   :  { %375 = vadd.xlane.f32.xlu0 %v536_v17 }
 0x2d9   :  { %537 = vpow2.f32 %v361_v18 }
 0x2dc   :  { %v340_v19 = vpop.xlane.xlu0 %339 }
 0x2dd   :  { %v714_v20 = vsub.f32 %v323_v57, %v340_v19 }
 0x2df   :  { %v538_v21 = vpop.eup %537  ;;  %v363_v22 = vmul.f32 1.442695, %v714_v20 }
 0x2e0   :  { %377 = vadd.xlane.f32.xlu1 %v538_v21 }
 0x2e1   :  { %539 = vpow2.f32 %v363_v22 }
 0x2e4   :  { %v342_v23 = vpop.xlane.xlu1 %341 }
 0x2e5   :  { %v350_v24 = vsub.f32 %v325_v59, %v342_v23 }
 0x2e7   :  { %v540_v25 = vpop.eup %539  ;;  %v365_v26 = vmul.f32 1.442695, %v350_v24 }
 0x2e8   :  { %379 = vadd.xlane.f32.xlu2 %v540_v25 }
 0x2e9   :  { %541 = vpow2.f32 %v365_v26 }
 0x2ef   :  { %v542_v27 = vpop.eup %541 }
 0x2f0   :  { %381 = vadd.xlane.f32.xlu0 %v542_v27 }
 0x32b   :  { %v368_v28 = vpop.xlane.xlu2 %367 }
 0x32c   :  { %543 = vlog2.f32 %v368_v28 }
 0x332   :  { %v544_v30 = vpop.eup %543 }
 0x333   :  { %v370_v29 = vpop.xlane.xlu0 %369  ;;  %v384_v31 = vmul.f32 0.6931472, %v544_v30 }
 0x334   :  { %545 = vlog2.f32 %v370_v29 }
 0x335   :  { %v399_v34 = vsub.f32 %v343_v61, %v384_v31 }
 0x33a   :  { %v546_v32 = vpop.eup %545 }
 0x33b   :  { %v386_v33 = vmul.f32 0.6931472, %v546_v32  ;;  %v372_v36 = vpop.xlane.xlu1 %371 }
 0x33c   :  { %547 = vlog2.f32 %v372_v36 }
 0x33d   :  { %v400_v35 = vsub.f32 %v344_v0, %v386_v33 }
 0x33f   :  { %v500_v37 = vpack.c.bf16 %v400_v35, %v399_v34 }
 0x341   :  { %501 = vst [vmem:[#allocation2] sm:$0xff] %v500_v37  }
 0x342   :  { %v548_v39 = vpop.eup %547 }
 0x343   :  { %v374_v38 = vpop.xlane.xlu2 %373  ;;  %v388_v40 = vmul.f32 0.6931472, %v548_v39 }
 0x344   :  { %549 = vlog2.f32 %v374_v38 }
 0x345   :  { %v401_v43 = vsub.f32 %v345_v4, %v388_v40 }
 0x34a   :  { %v550_v41 = vpop.eup %549 }
 0x34b   :  { %v390_v42 = vmul.f32 0.6931472, %v550_v41  ;;  %v376_v45 = vpop.xlane.xlu0 %375 }
 0x34c   :  { %551 = vlog2.f32 %v376_v45 }
 0x34d   :  { %v402_v44 = vsub.f32 %v346_v8, %v390_v42 }
 0x34f   :  { %v505_v46 = vpack.c.bf16 %v402_v44, %v401_v43 }
 0x351   :  { %517 = vst [vmem:[#allocation2 + $0x8] sm:$0xff] %v505_v46  }
 0x352   :  { %v552_v48 = vpop.eup %551 }
 0x353   :  { %v378_v47 = vpop.xlane.xlu1 %377  ;;  %v392_v49 = vmul.f32 0.6931472, %v552_v48 }
 0x354   :  { %553 = vlog2.f32 %v378_v47 }
 0x355   :  { %v403_v52 = vsub.f32 %v347_v12, %v392_v49 }
 0x35a   :  { %v554_v50 = vpop.eup %553 }
 0x35b   :  { %v394_v51 = vmul.f32 0.6931472, %v554_v50  ;;  %v380_v54 = vpop.xlane.xlu2 %379 }
 0x35c   :  { %555 = vlog2.f32 %v380_v54 }
 0x35d   :  { %v404_v53 = vsub.f32 %v348_v16, %v394_v51 }
 0x35f   :  { %v510_v55 = vpack.c.bf16 %v404_v53, %v403_v52 }
 0x361   :  { %518 = vst [vmem:[#allocation2 + $0x10] sm:$0xff] %v510_v55  }
 0x362   :  { %v556_v57 = vpop.eup %555 }
 0x363   :  { %v382_v56 = vpop.xlane.xlu0 %381  ;;  %v396_v58 = vmul.f32 0.6931472, %v556_v57 }
 0x364   :  { %557 = vlog2.f32 %v382_v56 }
 0x365   :  { %v405_v61 = vsub.f32 %v714_v20, %v396_v58 }
 0x36a   :  { %v558_v59 = vpop.eup %557 }
 0x36b   :  { %v398_v60 = vmul.f32 0.6931472, %v558_v59 }
 0x36d   :  { %v406_v62 = vsub.f32 %v350_v24, %v398_v60 }
 0x36f   :  { %v515_v63 = vpack.c.bf16 %v406_v62, %v405_v61 }
 0x371   :  { %519 = vst [vmem:[#allocation2 + $0x18] sm:$0xff] %v515_v63  }
 0x372   :  { %435 = dma.vmem_to_hbm [thread:$0]  %s428_s19, 512, %s430_s22, [#allocation3], %s586_s23, %s586_s23, %s587_s24  }
 0x373   :  { %583 = dma.done.wait [#allocation3], 512  }
 0x374   :  { %584 = vsyncadd [#allocation3], 4294966784 }
 0x375   :  { %440 = vsyncpa [#allocation3], 1 }

// kernel: tpu_custom_call.1
= control target key start
LH: loop header
LB: loop body
LE: loop exit
PB: predicated region body
PF: predicated region fallthrough
CT: control target
= control target key end

     0   :  { %s721_s0 = inlined_call_operand.vmem [shape: f32[64,32], index: 0, kind: input, shape index: {}]   ;;  %s722_s1 = inlined_call_operand.vmem [shape: bf16[32,32], index: 1, kind: input, shape index: {}]   ;;  %s723_s2 = inlined_call_operand.vmem [shape: f32[1,32], index: 2, kind: input, shape index: {}]   ;;  %s724_s3 = inlined_call_operand.vmem [shape: bf16[32,32], index: 3, kind: input, shape index: {}]   ;;  %s725_s4 = inlined_call_operand.vmem [shape: f32[1,32], index: 4, kind: input, shape index: {}]   ;;  %s726_s5 = inlined_call_operand.vmem [shape: bf16[32,32], index: 5, kind: input, shape index: {}]   ;;  %s727_s6 = inlined_call_operand.vmem [shape: f32[1,32], index: 6, kind: input, shape index: {}]   ;;  %s728_s7 = inlined_call_operand.vmem [shape: bf16[32,128], index: 7, kind: input, shape index: {}]   ;;  %s729_s8 = inlined_call_operand.vmem [shape: f32[1,128], index: 8, kind: input, shape index: {}]   ;;  %s730_s9 = inlined_call_operand.hbm [shape: bf16[64,128], index: 9, kind: output, shape index: {}]  }
   0x1   :  { %v490_v0 = vld [vmem:[%s722_s1 + $0x8] sm:$0xff]  ;;  %v489_v1 = vld [vmem:[%s722_s1] sm:$0xff] }
   0x2   :  { %85 = vmatpush.bf16.msra.mxu0 %v490_v0  ;;  %v34_v2 = vld [vmem:[%s721_s0] sm:$0xff]  ;;  %v35_v3 = vld [vmem:[%s721_s0 + $0x8] sm:$0xff] }
   0x3   :  { %14 = vsyncpa [#allocation3], 0  ;;  %v42_v4 = vpack.c.bf16 %v35_v3, %v34_v2  ;;  %vm66_vm0 = vcmask 261120   ;;  %v36_v5 = vld [vmem:[%s721_s0 + $0x10] sm:$0xff]  ;;  %v37_v6 = vld [vmem:[%s721_s0 + $0x18] sm:$0xff]  ;;  %s429_s22 = sshll.u32 %s730_s9, 4  ;;  %s430_s22 = int_to_ptr.hbm [resolvable:$true] %s429_s22 }
   0x4   :  { %v43_v7 = vpack.c.bf16 %v37_v6, %v36_v5  ;;  %v38_v8 = vld [vmem:[%s721_s0 + $0x20] sm:$0xff]  ;;  %v39_v9 = vld [vmem:[%s721_s0 + $0x28] sm:$0xff]  ;;  %v40_v11 = vld [vmem:[%s721_s0 + $0x30] sm:$0xff]  ;;  %s586_s23 = smov 64   ;;  %s587_s24 = smov 4  }
   0x5   :  { %v44_v10 = vpack.c.bf16 %v39_v9, %v38_v8  ;;  %v41_v12 = vld [vmem:[%s721_s0 + $0x38] sm:$0xff]  ;;  %v492_v14 = vld [vmem:[%s724_s3 + $0x8] sm:$0xff]  ;;  %v491_v15 = vld [vmem:[%s724_s3] sm:$0xff] }
   0x6   :  { %86 = vmatpush.bf16.msra.mxu0 %v489_v1  ;;  %v45_v13 = vpack.c.bf16 %v41_v12, %v40_v11  ;;  %158 = vmatpush.bf16.msra.mxu1 %v492_v14  ;;  %v523_v17 = vld [vmem:[%s723_s2] ss:$0 sm:$0xff]  ;;  %v494_v45 = vld [vmem:[%s726_s5 + $0x8] sm:$0xff] }
   0x7   :  { %231 = vmatpush.bf16.msra.mxu2 %v494_v45  ;;  %v493_v46 = vld [vmem:[%s726_s5] sm:$0xff]  ;;  %v496_v12 = vld [vmem:[%s728_s7 + $0x8] sm:$0xff] }
   0x8   :  { %v524_v48 = vld [vmem:[%s725_s4] ss:$0 sm:$0xff]  ;;  %304 = vmatpush.bf16.msra.mxu3 %v496_v12 }
   0x9   :  { %449 = vmatmul.msk.bf16.vlgmr.msra.gmra.mxu0 %vm66_vm0, %v42_v4 }
   0xa   :  { %159 = vmatpush.bf16.msra.mxu1 %v491_v15  ;;  %v525_v15 = vld [vmem:[%s727_s6] ss:$0 sm:$0xff] }
   0xb   :  { %232 = vmatpush.bf16.msra.mxu2 %v493_v46 }
  0x19   :  { %450 = vmatmul.msk.bf16.gmra.mxu0 %vm66_vm0, %v43_v7 }
  0x29   :  { %451 = vmatmul.msk.bf16.gmra.mxu0 %vm66_vm0, %v44_v10 }
  0x39   :  { %452 = vmatmul.msk.bf16.gmra.mxu0 %vm66_vm0, %v45_v13  ;;  %v495_v13 = vld [vmem:[%s728_s7] sm:$0xff] }
  0x3a   :  { %305 = vmatpush.bf16.msra.mxu3 %v495_v13 }
  0x86   :  { %v88_v16 = vpop.f32.mrf.mxu0 }
  0x87   :  { %v89_v18 = vadd.f32 %v523_v17, %v88_v16 }
  0x89   :  { %v108_v21 = vmax.f32 %v89_v18, 0.0 }
  0x8e   :  { %v90_v19 = vpop.f32.mrf.mxu0 }
  0x8f   :  { %v91_v20 = vadd.f32 %v523_v17, %v90_v19 }
  0x91   :  { %v109_v22 = vmax.f32 %v91_v20, 0.0 }
  0x93   :  { %v116_v23 = vpack.c.bf16 %v109_v22, %v108_v21 }
  0x95   :  { %461 = vmatmul.msk.bf16.vlgmr.msra.gmra.mxu1 %vm66_vm0, %v116_v23 }
  0x96   :  { %v93_v24 = vpop.f32.mrf.mxu0 }
  0x97   :  { %v94_v25 = vadd.f32 %v523_v17, %v93_v24 }
  0x99   :  { %v110_v28 = vmax.f32 %v94_v25, 0.0 }
  0x9e   :  { %v95_v26 = vpop.f32.mrf.mxu0 }
  0x9f   :  { %v96_v27 = vadd.f32 %v523_v17, %v95_v26 }
  0xa1   :  { %v111_v29 = vmax.f32 %v96_v27, 0.0 }
  0xa3   :  { %v117_v30 = vpack.c.bf16 %v111_v29, %v110_v28 }
  0xa5   :  { %462 = vmatmul.msk.bf16.gmra.mxu1 %vm66_vm0, %v117_v30 }
  0xa6   :  { %v98_v31 = vpop.f32.mrf.mxu0 }
  0xa7   :  { %v99_v32 = vadd.f32 %v523_v17, %v98_v31 }
  0xa9   :  { %v112_v35 = vmax.f32 %v99_v32, 0.0 }
  0xae   :  { %v100_v33 = vpop.f32.mrf.mxu0 }
  0xaf   :  { %v101_v34 = vadd.f32 %v523_v17, %v100_v33 }
  0xb1   :  { %v113_v36 = vmax.f32 %v101_v34, 0.0 }
  0xb3   :  { %v118_v37 = vpack.c.bf16 %v113_v36, %v112_v35 }
  0xb5   :  { %463 = vmatmul.msk.bf16.gmra.mxu1 %vm66_vm0, %v118_v37 }
  0xb6   :  { %v103_v38 = vpop.f32.mrf.mxu0 }
  0xb7   :  { %v104_v39 = vadd.f32 %v523_v17, %v103_v38 }
  0xb9   :  { %v114_v42 = vmax.f32 %v104_v39, 0.0 }
  0xbe   :  { %v105_v40 = vpop.f32.mrf.mxu0 }
  0xbf   :  { %v106_v41 = vadd.f32 %v523_v17, %v105_v40 }
  0xc1   :  { %v115_v43 = vmax.f32 %v106_v41, 0.0 }
  0xc3   :  { %v119_v44 = vpack.c.bf16 %v115_v43, %v114_v42  ;;  %v526_v43 = vld [vmem:[%s729_s8] ss:$0 sm:$0xff]  ;;  %s585_s8 = smov [#allocation2]  }
  0xc4   :  { %s427_s19 = sshll.u32 %s585_s8, 4  ;;  %s428_s19 = int_to_ptr.vmem [resolvable:$true] %s427_s19 }
  0xc5   :  { %464 = vmatmul.msk.bf16.gmra.mxu1 %vm66_vm0, %v119_v44 }
 0x112   :  { %v161_v47 = vpop.f32.mrf.mxu1 }
 0x113   :  { %v162_v49 = vadd.f32 %v524_v48, %v161_v47 }
 0x115   :  { %v181_v52 = vmax.f32 %v162_v49, 0.0 }
 0x11a   :  { %v163_v50 = vpop.f32.mrf.mxu1 }
 0x11b   :  { %v164_v51 = vadd.f32 %v524_v48, %v163_v50 }
 0x11d   :  { %v182_v53 = vmax.f32 %v164_v51, 0.0 }
 0x11f   :  { %v189_v54 = vpack.c.bf16 %v182_v53, %v181_v52 }
 0x121   :  { %473 = vmatmul.msk.bf16.vlgmr.msra.gmra.mxu2 %vm66_vm0, %v189_v54 }
 0x122   :  { %v166_v55 = vpop.f32.mrf.mxu1 }
 0x123   :  { %v167_v56 = vadd.f32 %v524_v48, %v166_v55 }
 0x125   :  { %v183_v59 = vmax.f32 %v167_v56, 0.0 }
 0x12a   :  { %v168_v57 = vpop.f32.mrf.mxu1 }
 0x12b   :  { %v169_v58 = vadd.f32 %v524_v48, %v168_v57 }
 0x12d   :  { %v184_v60 = vmax.f32 %v169_v58, 0.0 }
 0x12f   :  { %v190_v61 = vpack.c.bf16 %v184_v60, %v183_v59 }
 0x131   :  { %474 = vmatmul.msk.bf16.gmra.mxu2 %vm66_vm0, %v190_v61 }
 0x132   :  { %v171_v62 = vpop.f32.mrf.mxu1 }
 0x133   :  { %v172_v63 = vadd.f32 %v524_v48, %v171_v62 }
 0x135   :  { %v185_v2 = vmax.f32 %v172_v63, 0.0 }
 0x13a   :  { %v173_v0 = vpop.f32.mrf.mxu1 }
 0x13b   :  { %v174_v1 = vadd.f32 %v524_v48, %v173_v0 }
 0x13d   :  { %v186_v3 = vmax.f32 %v174_v1, 0.0 }
 0x13f   :  { %v191_v4 = vpack.c.bf16 %v186_v3, %v185_v2 }
 0x141   :  { %475 = vmatmul.msk.bf16.gmra.mxu2 %vm66_vm0, %v191_v4 }
 0x142   :  { %v176_v5 = vpop.f32.mrf.mxu1 }
 0x143   :  { %v177_v6 = vadd.f32 %v524_v48, %v176_v5 }
 0x145   :  { %v187_v9 = vmax.f32 %v177_v6, 0.0 }
 0x14a   :  { %v178_v7 = vpop.f32.mrf.mxu1 }
 0x14b   :  { %v179_v8 = vadd.f32 %v524_v48, %v178_v7 }
 0x14d   :  { %v188_v10 = vmax.f32 %v179_v8, 0.0 }
 0x14f   :  { %v192_v11 = vpack.c.bf16 %v188_v10, %v187_v9 }
 0x151   :  { %476 = vmatmul.msk.bf16.gmra.mxu2 %vm66_vm0, %v192_v11 }
 0x1a4   :  { %v234_v14 = vpop.f32.mrf.mxu2 }
 0x1a5   :  { %v235_v16 = vadd.f32 %v525_v15, %v234_v14 }
 0x1a7   :  { %v254_v19 = vmax.f32 %v235_v16, 0.0 }
 0x1ac   :  { %v236_v17 = vpop.f32.mrf.mxu2 }
 0x1ad   :  { %v237_v18 = vadd.f32 %v525_v15, %v236_v17 }
 0x1af   :  { %v255_v20 = vmax.f32 %v237_v18, 0.0 }
 0x1b1   :  { %v262_v21 = vpack.c.bf16 %v255_v20, %v254_v19 }
 0x1b3   :  { %485 = vmatmul.msk.bf16.vlgmr.msra.gmra.mxu3 %vm66_vm0, %v262_v21 }
 0x1b4   :  { %v239_v22 = vpop.f32.mrf.mxu2 }
 0x1b5   :  { %v240_v23 = vadd.f32 %v525_v15, %v239_v22 }
 0x1b7   :  { %v256_v26 = vmax.f32 %v240_v23, 0.0 }
 0x1bc   :  { %v241_v24 = vpop.f32.mrf.mxu2 }
 0x1bd   :  { %v242_v25 = vadd.f32 %v525_v15, %v241_v24 }
 0x1bf   :  { %v257_v27 = vmax.f32 %v242_v25, 0.0 }
 0x1c1   :  { %v263_v28 = vpack.c.bf16 %v257_v27, %v256_v26 }
 0x1c3   :  { %486 = vmatmul.msk.bf16.gmra.mxu3 %vm66_vm0, %v263_v28 }
 0x1c4   :  { %v244_v29 = vpop.f32.mrf.mxu2 }
 0x1c5   :  { %v245_v30 = vadd.f32 %v525_v15, %v244_v29 }
 0x1c7   :  { %v258_v33 = vmax.f32 %v245_v30, 0.0 }
 0x1cc   :  { %v246_v31 = vpop.f32.mrf.mxu2 }
 0x1cd   :  { %v247_v32 = vadd.f32 %v525_v15, %v246_v31 }
 0x1cf   :  { %v259_v34 = vmax.f32 %v247_v32, 0.0 }
 0x1d1   :  { %v264_v35 = vpack.c.bf16 %v259_v34, %v258_v33 }
 0x1d3   :  { %487 = vmatmul.msk.bf16.gmra.mxu3 %vm66_vm0, %v264_v35 }
 0x1d4   :  { %v249_v36 = vpop.f32.mrf.mxu2 }
 0x1d5   :  { %v250_v37 = vadd.f32 %v525_v15, %v249_v36 }
 0x1d7   :  { %v260_v40 = vmax.f32 %v250_v37, 0.0 }
 0x1dc   :  { %v251_v38 = vpop.f32.mrf.mxu2 }
 0x1dd   :  { %v252_v39 = vadd.f32 %v525_v15, %v251_v38 }
 0x1df   :  { %v261_v41 = vmax.f32 %v252_v39, 0.0 }
 0x1e1   :  { %v265_v42 = vpack.c.bf16 %v261_v41, %v260_v40 }
 0x1e3   :  { %488 = vmatmul.msk.bf16.gmra.mxu3 %vm66_vm0, %v265_v42 }
 0x236   :  { %v307_v44 = vpop.f32.mrf.mxu3 }
 0x237   :  { %v308_v45 = vadd.f32 %v526_v43, %v307_v44 }
 0x239   :  { %327 = vmax.xlane.f32.xlu0 %v308_v45 }
 0x23e   :  { %v309_v46 = vpop.f32.mrf.mxu3 }
 0x23f   :  { %v310_v47 = vadd.f32 %v526_v43, %v309_v46 }
 0x241   :  { %329 = vmax.xlane.f32.xlu0 %v310_v47 }
 0x246   :  { %v312_v48 = vpop.f32.mrf.mxu3 }
 0x247   :  { %v313_v49 = vadd.f32 %v526_v43, %v312_v48 }
 0x249   :  { %331 = vmax.xlane.f32.xlu1 %v313_v49 }
 0x24e   :  { %v314_v50 = vpop.f32.mrf.mxu3 }
 0x24f   :  { %v315_v51 = vadd.f32 %v526_v43, %v314_v50 }
 0x251   :  { %333 = vmax.xlane.f32.xlu1 %v315_v51 }
 0x256   :  { %v317_v52 = vpop.f32.mrf.mxu3 }
 0x257   :  { %v318_v53 = vadd.f32 %v526_v43, %v317_v52 }
 0x259   :  { %335 = vmax.xlane.f32.xlu2 %v318_v53 }
 0x25e   :  { %v319_v54 = vpop.f32.mrf.mxu3 }
 0x25f   :  { %v320_v55 = vadd.f32 %v526_v43, %v319_v54 }
 0x261   :  { %337 = vmax.xlane.f32.xlu2 %v320_v55 }
 0x266   :  { %v322_v56 = vpop.f32.mrf.mxu3 }
 0x267   :  { %v323_v57 = vadd.f32 %v526_v43, %v322_v56 }
 0x269   :  { %339 = vmax.xlane.f32.xlu0 %v323_v57 }
 0x26e   :  { %v324_v58 = vpop.f32.mrf.mxu3 }
 0x26f   :  { %v325_v59 = vadd.f32 %v526_v43, %v324_v58 }
 0x271   :  { %341 = vmax.xlane.f32.xlu1 %v325_v59 }
 0x2ac   :  { %v328_v60 = vpop.xlane.xlu0 %327 }
 0x2ad   :  { %v343_v61 = vsub.f32 %v308_v45, %v328_v60 }
 0x2af   :  { %v351_v62 = vmul.f32 1.442695, %v343_v61 }
 0x2b1   :  { %527 = vpow2.f32 %v351_v62 }
 0x2b4   :  { %v330_v63 = vpop.xlane.xlu0 %329 }
 0x2b5   :  { %v344_v0 = vsub.f32 %v310_v47, %v330_v63 }
 0x2b7   :  { %v528_v1 = vpop.eup %527  ;;  %v353_v2 = vmul.f32 1.442695, %v344_v0 }
 0x2b8   :  { %367 = vadd.xlane.f32.xlu2 %v528_v1 }
 0x2b9   :  { %529 = vpow2.f32 %v353_v2 }
 0x2bc   :  { %v332_v3 = vpop.xlane.xlu1 %331 }
 0x2bd   :  { %v345_v4 = vsub.f32 %v313_v49, %v332_v3 }
 0x2bf   :  { %v530_v5 = vpop.eup %529  ;;  %v355_v6 = vmul.f32 1.442695, %v345_v4 }
 0x2c0   :  { %369 = vadd.xlane.f32.xlu0 %v530_v5 }
 0x2c1   :  { %531 = vpow2.f32 %v355_v6 }
 0x2c4   :  { %v334_v7 = vpop.xlane.xlu1 %333 }
 0x2c5   :  { %v346_v8 = vsub.f32 %v315_v51, %v334_v7 }
 0x2c7   :  { %v532_v9 = vpop.eup %531  ;;  %v357_v10 = vmul.f32 1.442695, %v346_v8 }
 0x2c8   :  { %371 = vadd.xlane.f32.xlu1 %v532_v9 }
 0x2c9   :  { %533 = vpow2.f32 %v357_v10 }
 0x2cc   :  { %v336_v11 = vpop.xlane.xlu2 %335 }
 0x2cd   :  { %v347_v12 = vsub.f32 %v318_v53, %v336_v11 }
 0x2cf   :  { %v534_v13 = vpop.eup %533  ;;  %v359_v14 = vmul.f32 1.442695, %v347_v12 }
 0x2d0   :  { %373 = vadd.xlane.f32.xlu2 %v534_v13 }
 0x2d1   :  { %535 = vpow2.f32 %v359_v14 }
 0x2d4   :  { %v338_v15 = vpop.xlane.xlu2 %337 }
 0x2d5   :  { %v348_v16 = vsub.f32 %v320_v55, %v338_v15 }
 0x2d7   :  { %v536_v17 = vpop.eup %535  ;;  %v361_v18 = vmul.f32 1.442695, %v348_v16 }
 0x2d8   :  { %375 = vadd.xlane.f32.xlu0 %v536_v17 }
 0x2d9   :  { %537 = vpow2.f32 %v361_v18 }
 0x2dc   :  { %v340_v19 = vpop.xlane.xlu0 %339 }
 0x2dd   :  { %v714_v20 = vsub.f32 %v323_v57, %v340_v19 }
 0x2df   :  { %v538_v21 = vpop.eup %537  ;;  %v363_v22 = vmul.f32 1.442695, %v714_v20 }
 0x2e0   :  { %377 = vadd.xlane.f32.xlu1 %v538_v21 }
 0x2e1   :  { %539 = vpow2.f32 %v363_v22 }
 0x2e4   :  { %v342_v23 = vpop.xlane.xlu1 %341 }
 0x2e5   :  { %v350_v24 = vsub.f32 %v325_v59, %v342_v23 }
 0x2e7   :  { %v540_v25 = vpop.eup %539  ;;  %v365_v26 = vmul.f32 1.442695, %v350_v24 }
 0x2e8   :  { %379 = vadd.xlane.f32.xlu2 %v540_v25 }
 0x2e9   :  { %541 = vpow2.f32 %v365_v26 }
 0x2ef   :  { %v542_v27 = vpop.eup %541 }
 0x2f0   :  { %381 = vadd.xlane.f32.xlu0 %v542_v27 }
 0x32b   :  { %v368_v28 = vpop.xlane.xlu2 %367 }
 0x32c   :  { %543 = vlog2.f32 %v368_v28 }
 0x332   :  { %v544_v30 = vpop.eup %543 }
 0x333   :  { %v370_v29 = vpop.xlane.xlu0 %369  ;;  %v384_v31 = vmul.f32 0.6931472, %v544_v30 }
 0x334   :  { %545 = vlog2.f32 %v370_v29 }
 0x335   :  { %v399_v34 = vsub.f32 %v343_v61, %v384_v31 }
 0x33a   :  { %v546_v32 = vpop.eup %545 }
 0x33b   :  { %v386_v33 = vmul.f32 0.6931472, %v546_v32  ;;  %v372_v36 = vpop.xlane.xlu1 %371 }
 0x33c   :  { %547 = vlog2.f32 %v372_v36 }
 0x33d   :  { %v400_v35 = vsub.f32 %v344_v0, %v386_v33 }
 0x33f   :  { %v500_v37 = vpack.c.bf16 %v400_v35, %v399_v34 }
 0x341   :  { %501 = vst [vmem:[#allocation2] sm:$0xff] %v500_v37  }
 0x342   :  { %v548_v39 = vpop.eup %547 }
 0x343   :  { %v374_v38 = vpop.xlane.xlu2 %373  ;;  %v388_v40 = vmul.f32 0.6931472, %v548_v39 }
 0x344   :  { %549 = vlog2.f32 %v374_v38 }
 0x345   :  { %v401_v43 = vsub.f32 %v345_v4, %v388_v40 }
 0x34a   :  { %v550_v41 = vpop.eup %549 }
 0x34b   :  { %v390_v42 = vmul.f32 0.6931472, %v550_v41  ;;  %v376_v45 = vpop.xlane.xlu0 %375 }
 0x34c   :  { %551 = vlog2.f32 %v376_v45 }
 0x34d   :  { %v402_v44 = vsub.f32 %v346_v8, %v390_v42 }
 0x34f   :  { %v505_v46 = vpack.c.bf16 %v402_v44, %v401_v43 }
 0x351   :  { %517 = vst [vmem:[#allocation2 + $0x8] sm:$0xff] %v505_v46  }
 0x352   :  { %v552_v48 = vpop.eup %551 }
 0x353   :  { %v378_v47 = vpop.xlane.xlu1 %377  ;;  %v392_v49 = vmul.f32 0.6931472, %v552_v48 }
 0x354   :  { %553 = vlog2.f32 %v378_v47 }
 0x355   :  { %v403_v52 = vsub.f32 %v347_v12, %v392_v49 }
 0x35a   :  { %v554_v50 = vpop.eup %553 }
 0x35b   :  { %v394_v51 = vmul.f32 0.6931472, %v554_v50  ;;  %v380_v54 = vpop.xlane.xlu2 %379 }
 0x35c   :  { %555 = vlog2.f32 %v380_v54 }
 0x35d   :  { %v404_v53 = vsub.f32 %v348_v16, %v394_v51 }
 0x35f   :  { %v510_v55 = vpack.c.bf16 %v404_v53, %v403_v52 }
 0x361   :  { %518 = vst [vmem:[#allocation2 + $0x10] sm:$0xff] %v510_v55  }
 0x362   :  { %v556_v57 = vpop.eup %555 }
 0x363   :  { %v382_v56 = vpop.xlane.xlu0 %381  ;;  %v396_v58 = vmul.f32 0.6931472, %v556_v57 }
 0x364   :  { %557 = vlog2.f32 %v382_v56 }
 0x365   :  { %v405_v61 = vsub.f32 %v714_v20, %v396_v58 }
 0x36a   :  { %v558_v59 = vpop.eup %557 }
 0x36b   :  { %v398_v60 = vmul.f32 0.6931472, %v558_v59 }
 0x36d   :  { %v406_v62 = vsub.f32 %v350_v24, %v398_v60 }
 0x36f   :  { %v515_v63 = vpack.c.bf16 %v406_v62, %v405_v61 }
 0x371   :  { %519 = vst [vmem:[#allocation2 + $0x18] sm:$0xff] %v515_v63  }
 0x372   :  { %435 = dma.vmem_to_hbm [thread:$0]  %s428_s19, 512, %s430_s22, [#allocation3], %s586_s23, %s586_s23, %s587_s24  }
 0x373   :  { %583 = dma.done.wait [#allocation3], 512  }
 0x374   :  { %584 = vsyncadd [#allocation3], 4294966784 }
 0x375   :  { %440 = vsyncpa [#allocation3], 1 }

</bundles_post_ra>
